<compile_context>
chip_gen: v7x
topology: tpu7x:2x2x1
jax: 0.10.0
libtpu: 0.0.40
codegen_flags: <defaults>
</compile_context>

<pallas_src>
import functools

import jax
import jax.numpy as jnp
from jax.experimental import pallas as pl
from jax.experimental.pallas import tpu as pltpu


_SQRT_2_OVER_PI = 0.7978845608028654
_GELU_COEFF = 0.044715


def _gelu_linear_kernel(x_ref, w_ref, b_ref, o_ref, acc_ref):
    # x_ref: [tm, tk]   w_ref: [tn, tk] (PyTorch layout)   b_ref: [1, tn]
    k = pl.program_id(2)

    @pl.when(k == 0)
    def _():
        acc_ref[...] = jnp.zeros_like(acc_ref)

    # x @ w.T on the MXU, f32 accumulation.  Contract the last dim of both
    # operands (transposed-RHS matmul) so the weight keeps its HBM layout.
    acc_ref[...] += jax.lax.dot_general(
        x_ref[...],
        w_ref[...],
        dimension_numbers=(((1,), (1,)), ((), ())),
        preferred_element_type=jnp.float32,
    )

    @pl.when(k == pl.num_programs(2) - 1)
    def _():
        y = acc_ref[...] + b_ref[...].astype(jnp.float32)
        # tanh-approximate GELU (== F.gelu(approximate='tanh')).
        inner = _SQRT_2_OVER_PI * (y + _GELU_COEFF * y * y * y)
        g = 0.5 * y * (1.0 + jnp.tanh(inner))
        o_ref[...] = g.astype(o_ref.dtype)


def _round_up(x, m):
    return (x + m - 1) // m * m


def gelu_forward(hidden_states, weight, bias, *, tm_max=256, tn_max=512, tk_max=512):
    """hidden_states: [..., dim_in]; weight: [dim_out, dim_in] (PyTorch layout); bias: [dim_out]."""
    *lead, dim_in = hidden_states.shape
    dim_out = weight.shape[0]
    m = 1
    for d in lead:
        m *= d
    x2d = hidden_states.reshape(m, dim_in)

    # Tile sizes: lane axes (N, K) multiples of 128, sublane axis (M) multiple of 8.
    tm = min(tm_max, _round_up(m, 8))
    tn = min(tn_max, _round_up(dim_out, 128))
    tk = min(tk_max, _round_up(dim_in, 128))
    mp = _round_up(m, tm)
    np_ = _round_up(dim_out, tn)
    kp = _round_up(dim_in, tk)

    # Zero-pad to tile multiples (zeros in K contribute nothing to the matmul;
    # padded M rows / N cols are sliced away below).
    x_p = jnp.pad(x2d, ((0, mp - m), (0, kp - dim_in)))
    w_p = jnp.pad(weight, ((0, np_ - dim_out), (0, kp - dim_in)))
    b_p = jnp.pad(bias, (0, np_ - dim_out)).reshape(1, np_)

    grid = (mp // tm, np_ // tn, kp // tk)
    itemsize = jnp.dtype(hidden_states.dtype).itemsize

    out_p = pl.pallas_call(
        _gelu_linear_kernel,
        out_shape=jax.ShapeDtypeStruct((mp, np_), hidden_states.dtype),
        grid_spec=pltpu.PrefetchScalarGridSpec(
            num_scalar_prefetch=0,
            grid=grid,
            in_specs=[
                pl.BlockSpec((tm, tk), lambda i, j, k: (i, k)),   # x tile
                pl.BlockSpec((tn, tk), lambda i, j, k: (j, k)),   # weight tile (PyTorch layout)
                pl.BlockSpec((1, tn), lambda i, j, k: (0, j)),    # bias tile
            ],
            out_specs=pl.BlockSpec((tm, tn), lambda i, j, k: (i, j)),
            scratch_shapes=[pltpu.VMEM((tm, tn), jnp.float32)],
        ),
        compiler_params=pltpu.CompilerParams(
            dimension_semantics=("parallel", "parallel", "arbitrary"),
        ),
        cost_estimate=pl.CostEstimate(
            flops=2 * mp * kp * np_,
            transcendentals=mp * np_,
            bytes_accessed=(mp * kp + np_ * kp + mp * np_) * itemsize,
        ),
    )(x_p, w_p, b_p)

    out = out_p[:m, :dim_out]
    return out.reshape(*lead, dim_out)


def _gelu_tanh_ref(y):
    inner = _SQRT_2_OVER_PI * (y + _GELU_COEFF * y * y * y)
    return 0.5 * y * (1.0 + jnp.tanh(inner))


if __name__ == "__main__":
    key = jax.random.PRNGKey(0)
    k_x, k_w, k_b = jax.random.split(key, 3)

    batch, seq, dim_in, dim_out = 2, 8, 32, 32

    hidden_states = jax.random.normal(k_x, (batch, seq, dim_in), dtype=jnp.float32)
    # nn.Linear params in PyTorch layout: weight [dim_out, dim_in], bias [dim_out].
    weight = jax.random.normal(k_w, (dim_out, dim_in), dtype=jnp.float32) * 0.05
    bias = jax.random.normal(k_b, (dim_out,), dtype=jnp.float32) * 0.01

    out = gelu_forward(hidden_states, weight, bias)
    jax.block_until_ready(out)

    # Reference in plain JAX.
    y_ref = hidden_states @ weight.T + bias
    ref_tanh = _gelu_tanh_ref(y_ref)                      # same formula as kernel
    ref_exact = jax.nn.gelu(y_ref, approximate=False)     # erf-based spec semantics

    assert out.shape == (batch, seq, dim_out), "bad output shape"
    assert jnp.allclose(out, ref_tanh, atol=1e-5, rtol=1e-5), "mismatch vs tanh-GELU reference"
    assert jnp.allclose(out, ref_exact, atol=2e-3, rtol=2e-3), "mismatch vs exact-GELU reference"

    print("KERNEL_OK")
</pallas_src>

<mosaic_0001>
module attributes {stable_mosaic.version = 11 : i64} {
  func.func @_gelu_linear_kernel(%arg0: i32, %arg1: i32, %arg2: i32, %arg3: memref<16x128xf32, #tpu.memory_space<vmem>>, %arg4: memref<128x128xf32, #tpu.memory_space<vmem>>, %arg5: memref<1x128xf32, #tpu.memory_space<vmem>>, %arg6: memref<16x128xf32, #tpu.memory_space<vmem>>, %arg7: memref<16x128xf32, #tpu.memory_space<vmem>>) attributes {dimension_semantics = [#tpu.dimension_semantics<parallel>, #tpu.dimension_semantics<parallel>, #tpu.dimension_semantics<arbitrary>], iteration_bounds = array<i64: 1, 1, 1>, scalar_prefetch = 0 : i64, scratch_operands = 1 : i64, tpu.core_type = #tpu.core_type<tc>, window_params = [{transform_indices = @transform_0, window_bounds = array<i64: 16, 128>}, {transform_indices = @transform_1, window_bounds = array<i64: 128, 128>}, {transform_indices = @transform_2, window_bounds = array<i64: 1, 128>}, {transform_indices = @transform_3, window_bounds = array<i64: 16, 128>}]} {
    %c0_i32 = arith.constant 0 : i32
    %0 = arith.cmpi eq, %arg2, %c0_i32 : i32
    %1 = arith.extui %0 : i1 to i32
    %c0_i32_0 = arith.constant 0 : i32
    %2 = arith.cmpi ne, %1, %c0_i32_0 : i32
    scf.if %2 {
      %cst_10 = arith.constant 0.000000e+00 : f32
      %12 = vector.broadcast %cst_10 : f32 to vector<16x128xf32>
      %c0_11 = arith.constant 0 : index
      %c0_12 = arith.constant 0 : index
      %13 = vector.load %arg7[%c0_11, %c0_12] : memref<16x128xf32, #tpu.memory_space<vmem>>, vector<16x128xf32>
      tpu.vector_store %arg7[%c0_11, %c0_12], %12 {strides = array<i32>} : memref<16x128xf32, #tpu.memory_space<vmem>>, vector<16x128xf32>,
    } else {
    }
    %c0 = arith.constant 0 : index
    %c0_1 = arith.constant 0 : index
    %3 = vector.load %arg7[%c0, %c0_1] : memref<16x128xf32, #tpu.memory_space<vmem>>, vector<16x128xf32>
    %c0_2 = arith.constant 0 : index
    %c0_3 = arith.constant 0 : index
    %4 = vector.load %arg3[%c0_2, %c0_3] : memref<16x128xf32, #tpu.memory_space<vmem>>, vector<16x128xf32>
    %c0_4 = arith.constant 0 : index
    %c0_5 = arith.constant 0 : index
    %5 = vector.load %arg4[%c0_4, %c0_5] : memref<128x128xf32, #tpu.memory_space<vmem>>, vector<128x128xf32>
    %cst = arith.constant dense<0.000000e+00> : vector<16x128xf32>
    %6 = tpu.matmul %4, %5, %cst {dimension_numbers = #tpu.dot_dimension_numbers<[1], [1], [0], [0], [0, 0, 1, 0], [], []>} : vector<16x128xf32>, vector<128x128xf32>, vector<16x128xf32> -> vector<16x128xf32>
    %7 = arith.addf %3, %6 : vector<16x128xf32>
    %c0_6 = arith.constant 0 : index
    %c0_7 = arith.constant 0 : index
    %8 = vector.load %arg7[%c0_6, %c0_7] : memref<16x128xf32, #tpu.memory_space<vmem>>, vector<16x128xf32>
    tpu.vector_store %arg7[%c0_6, %c0_7], %7 {strides = array<i32>} : memref<16x128xf32, #tpu.memory_space<vmem>>, vector<16x128xf32>,
    %c0_i32_8 = arith.constant 0 : i32
    %9 = arith.cmpi eq, %arg2, %c0_i32_8 : i32
    %10 = arith.extui %9 : i1 to i32
    %c0_i32_9 = arith.constant 0 : i32
    %11 = arith.cmpi ne, %10, %c0_i32_9 : i32
    scf.if %11 {
      %c0_10 = arith.constant 0 : index
      %c0_11 = arith.constant 0 : index
      %12 = vector.load %arg7[%c0_10, %c0_11] : memref<16x128xf32, #tpu.memory_space<vmem>>, vector<16x128xf32>
      %c0_12 = arith.constant 0 : index
      %c0_13 = arith.constant 0 : index
      %13 = vector.load %arg5[%c0_12, %c0_13] : memref<1x128xf32, #tpu.memory_space<vmem>>, vector<1x128xf32>
      %14 = vector.broadcast %13 : vector<1x128xf32> to vector<16x128xf32>
      %15 = arith.addf %12, %14 : vector<16x128xf32>
      %cst_14 = arith.constant 4.471500e-02 : f32
      %16 = vector.broadcast %cst_14 : f32 to vector<16x128xf32>
      %17 = arith.mulf %16, %15 : vector<16x128xf32>
      %18 = arith.mulf %17, %15 : vector<16x128xf32>
      %19 = arith.mulf %18, %15 : vector<16x128xf32>
      %20 = arith.addf %15, %19 : vector<16x128xf32>
      %cst_15 = arith.constant 0.797884583 : f32
      %21 = vector.broadcast %cst_15 : f32 to vector<16x128xf32>
      %22 = arith.mulf %21, %20 : vector<16x128xf32>
      %cst_16 = arith.constant 5.000000e-01 : f32
      %23 = vector.broadcast %cst_16 : f32 to vector<16x128xf32>
      %24 = arith.mulf %23, %15 : vector<16x128xf32>
      %25 = math.tanh %22 : vector<16x128xf32>
      %cst_17 = arith.constant 1.000000e+00 : f32
      %26 = vector.broadcast %cst_17 : f32 to vector<16x128xf32>
      %27 = arith.addf %26, %25 : vector<16x128xf32>
      %28 = arith.mulf %24, %27 : vector<16x128xf32>
      %c0_18 = arith.constant 0 : index
      %c0_19 = arith.constant 0 : index
      %29 = vector.load %arg6[%c0_18, %c0_19] : memref<16x128xf32, #tpu.memory_space<vmem>>, vector<16x128xf32>
      tpu.vector_store %arg6[%c0_18, %c0_19], %28 {strides = array<i32>} : memref<16x128xf32, #tpu.memory_space<vmem>>, vector<16x128xf32>,
    } else {
    }
    return
  }
  func.func @transform_0(%arg0: i32, %arg1: i32, %arg2: i32) -> (i32, i32) {
    %c0_i32 = arith.constant 0 : i32
    return %arg0, %arg2 : i32, i32
  }
  func.func @transform_1(%arg0: i32, %arg1: i32, %arg2: i32) -> (i32, i32) {
    %c0_i32 = arith.constant 0 : i32
    return %arg1, %arg2 : i32, i32
  }
  func.func @transform_2(%arg0: i32, %arg1: i32, %arg2: i32) -> (i32, i32) {
    %c0_i32 = arith.constant 0 : i32
    %c0_i32_0 = arith.constant 0 : i32
    return %c0_i32, %arg1 : i32, i32
  }
  func.func @transform_3(%arg0: i32, %arg1: i32, %arg2: i32) -> (i32, i32) {
    %c0_i32 = arith.constant 0 : i32
    return %arg0, %arg1 : i32, i32
  }
}

</mosaic_0001>

<bundles_post_ra>
// kernel: tpu_custom_call.1
= control target key start
LH: loop header
LB: loop body
LE: loop exit
PB: predicated region body
PF: predicated region fallthrough
CT: control target
= control target key end

     0   :  { %8 = vsyncpa [#allocation4], 0  ;;  %s440_s0 = inlined_call_operand.hbm [shape: f32[16,128], index: 0, kind: input, shape index: {}]   ;;  %s441_s1 = inlined_call_operand.hbm [shape: f32[128,128], index: 1, kind: input, shape index: {}]   ;;  %s442_s2 = inlined_call_operand.vmem [shape: f32[1,128], index: 2, kind: input, shape index: {}]   ;;  %s443_s3 = inlined_call_operand.hbm [shape: f32[16,128], index: 3, kind: output, shape index: {}]  }
   0x1   :  { %9 = vsyncpa [#allocation7], 0 }
   0x2   :  { %10 = vsyncpa [#allocation5], 0  ;;  %s367_s12 = smov [#allocation3]   ;;  %s295_s16 = scalar_lea.hbm %s440_s0, 256 }
   0x3   :  { %s16_s13 = sshll.u32 %s367_s12, 4  ;;  %p296_p0 = scmp.ne.s32.totalorder %s440_s0, %s295_s16  ;;  %s17_s13 = int_to_ptr.vmem [resolvable:$true] %s16_s13 }
   0x4   :  { %p299_p1 = scmp.lt.u32.totalorder %s295_s16, %s440_s0 }
   0x6   :  { %p301_p2 = pnand %p299_p1, %p296_p0 }
   0x8   :  { %304 = shalt.err (!%p301_p2)
}
   0x9   :  { %s305_s21 = scalar_lea.vmem %s17_s13, 256  ;;  %p310_p4 = scmp.lt.s32.totalorder %s17_s13, %s17_s13 }
   0xa   :  { %p306_p3 = scmp.ne.s32.totalorder %s17_s13, %s305_s21  ;;  %p311_p5 = scmp.lt.s32.totalorder %s305_s21, %s305_s21 }
   0xc   :  { %p312_p6 = por %p311_p5, %p310_p4 }
   0xe   :  { %p313_p7 = pnand %p312_p6, %p306_p3 }
  0x10   :  { %316 = shalt.err (!%p313_p7)
}
  0x11   :  { %s368_s22 = smov 128   ;;  %s369_s23 = smov 8  }
  0x12   :  { %22 = dma.hbm_to_vmem [thread:$0]  %s440_s0, 256, %s17_s13, [#allocation4], %s368_s22, %s368_s22, %s369_s23  }
  0x13   :  { %s370_s26 = smov [#allocation6]   ;;  %s317_s30 = scalar_lea.hbm %s441_s1, 2048 }
  0x14   :  { %s28_s27 = sshll.u32 %s370_s26, 4  ;;  %p318_p8 = scmp.ne.s32.totalorder %s441_s1, %s317_s30  ;;  %s29_s27 = int_to_ptr.vmem [resolvable:$true] %s28_s27 }
  0x15   :  { %p321_p9 = scmp.lt.u32.totalorder %s317_s30, %s441_s1 }
  0x17   :  { %p323_p10 = pnand %p321_p9, %p318_p8 }
  0x19   :  { %326 = shalt.err (!%p323_p10)
}
  0x1a   :  { %s327_s8 = scalar_lea.vmem %s29_s27, 2048  ;;  %p332_p12 = scmp.lt.s32.totalorder %s29_s27, %s29_s27 }
  0x1b   :  { %p328_p11 = scmp.ne.s32.totalorder %s29_s27, %s327_s8  ;;  %p333_p13 = scmp.lt.s32.totalorder %s327_s8, %s327_s8 }
  0x1d   :  { %p334_p0 = por %p333_p13, %p332_p12 }
  0x1f   :  { %p335_p1 = pnand %p334_p0, %p328_p11 }
  0x21   :  { %338 = shalt.err (!%p335_p1)
}
  0x22   :  { %34 = dma.hbm_to_vmem [thread:$0]  %s441_s1, 2048, %s29_s27, [#allocation7], %s368_s22, %s368_s22, %s369_s23  }
  0x23   :  { %361 = dma.done.wait [#allocation4], 256  }
  0x24   :  { %362 = vsyncadd [#allocation4], 4294967040 }
  0x25   :  { %363 = dma.done.wait [#allocation7], 2048  }
  0x26   :  { %364 = vsyncadd [#allocation7], 4294965248  ;;  %v53_v0 = vld [vmem:[#allocation6] sm:$0xff]  ;;  %v54_v1 = vld [vmem:[#allocation6 + $0x8] sm:$0xff] }
  0x27   :  { %v55_v2 = vld [vmem:[#allocation6 + $0x10] sm:$0xff]  ;;  %v254_v3 = vpack.c.bf16 %v54_v1, %v53_v0  ;;  %v56_v4 = vld [vmem:[#allocation6 + $0x18] sm:$0xff]  ;;  %v57_v7 = vld [vmem:[#allocation6 + $0x20] sm:$0xff] }
  0x28   :  { %v258_v5 = vpack.c.bf16 %v56_v4, %v55_v2  ;;  %v51_v6 = vld [vmem:[#allocation3] sm:$0xff]  ;;  %v58_v8 = vld [vmem:[#allocation6 + $0x28] sm:$0xff]  ;;  %v60_v11 = vld [vmem:[#allocation6 + $0x38] sm:$0xff] }
  0x29   :  { %255 = vmatprep.subr.bf16.mxu0 %v254_v3  ;;  %251 = vmatprep.mubr.f32.mxu0 %v51_v6  ;;  %v262_v9 = vpack.c.bf16 %v58_v8, %v57_v7  ;;  %v59_v10 = vld [vmem:[#allocation6 + $0x30] sm:$0xff]  ;;  %v61_v13 = vld [vmem:[#allocation6 + $0x40] sm:$0xff]  ;;  %v62_v14 = vld [vmem:[#allocation6 + $0x48] sm:$0xff] }
  0x2a   :  { %257 = vmatpush3.bf16.xpose.msra.mxu0 %v254_v3  ;;  %v266_v12 = vpack.c.bf16 %v60_v11, %v59_v10  ;;  %v270_v15 = vpack.c.bf16 %v62_v14, %v61_v13  ;;  %v63_v16 = vld [vmem:[#allocation6 + $0x50] sm:$0xff]  ;;  %v64_v17 = vld [vmem:[#allocation6 + $0x58] sm:$0xff]  ;;  %v65_v19 = vld [vmem:[#allocation6 + $0x60] sm:$0xff] }
  0x2b   :  { %259 = vmatprep.subr.bf16.mxu0 %v258_v5  ;;  %v274_v18 = vpack.c.bf16 %v64_v17, %v63_v16  ;;  %v66_v20 = vld [vmem:[#allocation6 + $0x68] sm:$0xff]  ;;  %v67_v22 = vld [vmem:[#allocation6 + $0x70] sm:$0xff]  ;;  %v68_v23 = vld [vmem:[#allocation6 + $0x78] sm:$0xff] }
  0x2c   :  { %v278_v21 = vpack.c.bf16 %v66_v20, %v65_v19  ;;  %v282_v24 = vpack.c.bf16 %v68_v23, %v67_v22  ;;  %v52_v25 = vld [vmem:[#allocation3 + $0x8] sm:$0xff]  ;;  %v200_v26 = vld [vmem:[%s442_s2] ss:$0 sm:$0xff]  ;;  %s371_s2 = smov [#allocation8]  }
  0x2d   :  { %s187_s11 = sshll.u32 %s371_s2, 4  ;;  %s188_s11 = int_to_ptr.vmem [resolvable:$true] %s187_s11 }
  0x2e   :  { %s339_s12 = scalar_lea.vmem %s188_s11, 256  ;;  %p344_p3 = scmp.lt.s32.totalorder %s188_s11, %s188_s11 }
  0x2f   :  { %p340_p2 = scmp.ne.s32.totalorder %s188_s11, %s339_s12  ;;  %p345_p4 = scmp.lt.s32.totalorder %s339_s12, %s339_s12 }
  0x31   :  { %p346_p5 = por %p345_p4, %p344_p3 }
  0x32   :  { %261 = vmatpush3.bf16.xpose.msra.mxu0 %v258_v5 }
  0x33   :  { %263 = vmatprep.subr.bf16.mxu0 %v262_v9  ;;  %p347_p6 = pnand %p346_p5, %p340_p2 }
  0x3a   :  { %265 = vmatpush3.bf16.xpose.msra.mxu0 %v262_v9 }
  0x3b   :  { %267 = vmatprep.subr.bf16.mxu0 %v266_v12 }
  0x42   :  { %269 = vmatpush3.bf16.xpose.msra.mxu0 %v266_v12 }
  0x43   :  { %271 = vmatprep.subr.bf16.mxu0 %v270_v15 }
  0x4a   :  { %273 = vmatpush3.bf16.xpose.msra.mxu0 %v270_v15 }
  0x4b   :  { %275 = vmatprep.subr.bf16.mxu0 %v274_v18 }
  0x52   :  { %277 = vmatpush3.bf16.xpose.msra.mxu0 %v274_v18 }
  0x53   :  { %279 = vmatprep.subr.bf16.mxu0 %v278_v21 }
  0x5a   :  { %281 = vmatpush3.bf16.xpose.msra.mxu0 %v278_v21 }
  0x5b   :  { %283 = vmatprep.subr.bf16.mxu0 %v282_v24 }
  0x62   :  { %285 = vmatpush3.bf16.xpose.msra.mxu0 %v282_v24 }
  0x69   :  { %252 = vmatmul.mubr.f32.vlgmr.msra.gmra.mrb[0].mxu0 %v52_v25 }
 0x13c   :  { %v253_v27 = vpop.f32.mrb[0].mxu0 }
 0x13d   :  { %v161_v28 = vadd.f32 %v253_v27, %v200_v26  ;;  %v135_v29 = vpop.f32.mrb[1].mxu0 }
 0x13e   :  { %v160_v30 = vadd.f32 %v200_v26, %v135_v29 }
 0x13f   :  { %v163_v31 = vmul.f32 0.044715, %v161_v28  ;;  %v173_v43 = vmul.f32 0.5, %v161_v28 }
 0x140   :  { %v162_v32 = vmul.f32 0.044715, %v160_v30  ;;  %v172_v45 = vmul.f32 0.5, %v160_v30 }
 0x141   :  { %v165_v33 = vmul.f32 %v163_v31, %v161_v28 }
 0x142   :  { %v164_v34 = vmul.f32 %v162_v32, %v160_v30 }
 0x143   :  { %v167_v35 = vmul.f32 %v165_v33, %v161_v28 }
 0x144   :  { %v166_v36 = vmul.f32 %v164_v34, %v160_v30 }
 0x145   :  { %v169_v37 = vadd.f32 %v167_v35, %v161_v28 }
 0x146   :  { %v168_v38 = vadd.f32 %v166_v36, %v160_v30 }
 0x147   :  { %v171_v39 = vmul.f32 0.7978846, %v169_v37 }
 0x148   :  { %v170_v40 = vmul.f32 0.7978846, %v168_v38 }
 0x149   :  { %291 = vtanh.f32 %v171_v39 }
 0x14a   :  { %293 = vtanh.f32 %v170_v40 }
 0x153   :  { %v292_v41 = vpop.eup %291 }
 0x154   :  { %v294_v42 = vpop.eup %293  ;;  %v177_v44 = vadd.f32 1.0, %v292_v41 }
 0x155   :  { %v176_v46 = vadd.f32 1.0, %v294_v42 }
 0x156   :  { %v179_v47 = vmul.f32 %v177_v44, %v173_v43 }
 0x157   :  { %v178_v48 = vmul.f32 %v176_v46, %v172_v45 }
 0x158   :  { %181 = vst [vmem:[#allocation8 + $0x8] sm:$0xff] %v179_v47 }
 0x159   :  { %180 = vst [vmem:[#allocation8] sm:$0xff] %v178_v48 }
 0x15a   :  { %350 = shalt.err (!%p347_p6)
}
 0x15b   :  { %s351_s15 = scalar_lea.hbm %s443_s3, 256 }
 0x15c   :  { %p352_p7 = scmp.ne.s32.totalorder %s443_s3, %s351_s15  ;;  %p355_p8 = scmp.lt.u32.totalorder %s351_s15, %s443_s3 }
 0x15e   :  { %p357_p9 = pnand %p355_p8, %p352_p7 }
 0x160   :  { %360 = shalt.err (!%p357_p9)
}
 0x161   :  { %193 = dma.vmem_to_hbm [thread:$0]  %s188_s11, 256, %s443_s3, [#allocation5], %s368_s22, %s368_s22, %s369_s23  }
 0x162   :  { %365 = dma.done.wait [#allocation5], 256  }
 0x163   :  { %366 = vsyncadd [#allocation5], 4294967040 }
 0x164   :  { %197 = vsyncpa [#allocation4], 1 }
 0x165   :  { %198 = vsyncpa [#allocation7], 1 }
 0x166   :  { %199 = vsyncpa [#allocation5], 1 }

</bundles_post_ra>
